<compile_context>
chip_gen: v7x
topology: tpu7x:2x2x1
jax: 0.10.0
libtpu: 0.0.40
codegen_flags: <defaults>
</compile_context>

<pallas_src>
import jax
import jax.numpy as jnp
from jax.experimental import pallas as pl
from jax.experimental.pallas import tpu as pltpu

LN_EPS = 1e-5


def sgu_kernel(x_ref, gamma_ref, beta_ref, w_ref, b_ref, o_ref):
    # x_ref: (TB, S, 2D) block; o_ref: (TB, S, D) block.
    tb, s, d = o_ref.shape

    gamma = gamma_ref[...].astype(jnp.float32)      # (1, D)
    beta = beta_ref[...].astype(jnp.float32)        # (1, D)
    w = w_ref[...]                                  # (S, S), bf16 (MXU-native)
    b = b_ref[...].astype(jnp.float32)              # (S, 1)

    # Static unroll over the batch tile: each iteration is one clean
    # (S,S) @ (S,D) MXU matmul plus VPU elementwise work.
    for t in range(tb):
        xt = x_ref[t].astype(jnp.float32)           # (S, 2D) -- u | v halves
        u = xt[:, :d]                               # (S, D)
        v = xt[:, d:]                               # (S, D)

        # --- LayerNorm over the feature (last) dim, f32 statistics ---
        mean = jnp.mean(v, axis=-1, keepdims=True)
        c = v - mean
        var = jnp.mean(c * c, axis=-1, keepdims=True)
        vn = c * jax.lax.rsqrt(var + LN_EPS)
        vn = vn * gamma + beta                      # (S, D)

        # --- spatial projection: Conv1d(S, S, 1) == (S x S) matmul ---
        # bf16 operands, f32 accumulate on the MXU.
        sp = jnp.dot(w, vn.astype(w.dtype), preferred_element_type=jnp.float32)
        sp = sp + b                                 # per-seq-row bias

        # --- gate ---
        o_ref[t] = (u * sp).astype(o_ref.dtype)


def _pick_batch_tile(batch, s, d, itemsize, vmem_block_budget=8 * 1024 * 1024):
    """Largest divisor of `batch` whose (x + out) per-step blocks fit the budget.

    Stops growing once the per-step slab is already wide (tb*d >= 512) since
    further batching only costs VMEM without hiding more overhead.
    """
    best = 1
    for cand in range(1, batch + 1):
        if batch % cand:
            continue
        # x block (tb,S,2D) + out block (tb,S,D), each double-buffered.
        block_bytes = 2 * cand * s * 3 * d * itemsize
        if block_bytes > vmem_block_budget:
            break
        best = cand
        if cand * d >= 512:
            break
    return best


def spatial_gating_unit(x, ln_gamma, ln_beta, sp_weight, sp_bias,
                        *, matmul_dtype=jnp.bfloat16):
    """x: (B, S, 2*D).  Returns (B, S, D).  tiny_attn=False forward path."""
    B, S, twoD = x.shape
    D = twoD // 2

    gamma = ln_gamma.reshape(1, D)
    beta = ln_beta.reshape(1, D)
    # Conv1d(S, S, 1) weight (S, S, 1) -> (S, S); store bf16 so the resident
    # weight is half the VMEM and the MXU runs at bf16 rate on all gens.
    w = sp_weight.reshape(S, S).astype(matmul_dtype)
    b = sp_bias.reshape(S, 1)

    TB = _pick_batch_tile(B, S, D, x.dtype.itemsize)
    grid = (B // TB,)

    # VMEM estimate: double-buffered x/out blocks + resident weight/affine.
    est = (2 * TB * S * (2 * D + D) * x.dtype.itemsize
           + 2 * S * S * w.dtype.itemsize
           + 2 * (2 * D + S) * 4)
    vmem_limit = min(64 * 1024 * 1024, max(32 * 1024 * 1024, int(1.5 * est)))

    return pl.pallas_call(
        sgu_kernel,
        out_shape=jax.ShapeDtypeStruct((B, S, D), x.dtype),
        grid_spec=pltpu.PrefetchScalarGridSpec(
            num_scalar_prefetch=0,
            grid=grid,
            in_specs=[
                # x fed unsplit: one (TB, S, 2D) block per step (no HBM copy).
                pl.BlockSpec((TB, S, 2 * D), lambda bi: (bi, 0, 0)),
                pl.BlockSpec((1, D), lambda bi: (0, 0)),    # gamma (resident)
                pl.BlockSpec((1, D), lambda bi: (0, 0)),    # beta  (resident)
                pl.BlockSpec((S, S), lambda bi: (0, 0)),    # spatial W (resident)
                pl.BlockSpec((S, 1), lambda bi: (0, 0)),    # spatial bias (resident)
            ],
            out_specs=pl.BlockSpec((TB, S, D), lambda bi: (bi, 0, 0)),
        ),
        compiler_params=pltpu.CompilerParams(
            dimension_semantics=("parallel",),
            vmem_limit_bytes=vmem_limit,
        ),
    )(x, gamma, beta, w, b)


def reference_f32(x, ln_gamma, ln_beta, sp_weight, sp_bias):
    """Pure-JAX f32 reference matching the PyTorch forward (tiny_attn=False)."""
    B, S, twoD = x.shape
    D = twoD // 2
    u, v = jnp.split(x, 2, axis=-1)
    mean = jnp.mean(v, axis=-1, keepdims=True)
    var = jnp.mean((v - mean) ** 2, axis=-1, keepdims=True)
    vn = (v - mean) / jnp.sqrt(var + LN_EPS)
    vn = vn * ln_gamma.reshape(1, 1, D) + ln_beta.reshape(1, 1, D)
    w = sp_weight.reshape(S, S)
    sp = jnp.einsum("ij,bjd->bid", w, vn) + sp_bias.reshape(1, S, 1)
    return u * sp


def reference_matched(x, ln_gamma, ln_beta, sp_weight, sp_bias,
                      matmul_dtype=jnp.bfloat16):
    """Same math, with the matmul operands cast like the kernel (f32 accumulate)."""
    B, S, twoD = x.shape
    D = twoD // 2
    u, v = jnp.split(x, 2, axis=-1)
    mean = jnp.mean(v, axis=-1, keepdims=True)
    var = jnp.mean((v - mean) ** 2, axis=-1, keepdims=True)
    vn = (v - mean) / jnp.sqrt(var + LN_EPS)
    vn = vn * ln_gamma.reshape(1, 1, D) + ln_beta.reshape(1, 1, D)
    w = sp_weight.reshape(S, S).astype(matmul_dtype)
    sp = jnp.einsum("ij,bjd->bid", w, vn.astype(matmul_dtype),
                    preferred_element_type=jnp.float32) + sp_bias.reshape(1, S, 1)
    return u * sp


if __name__ == "__main__":
    # Small shapes consistent with the module: batch=2, seq_len=8, d_ffn=32.
    B, S, D = 2, 8, 32

    key = jax.random.PRNGKey(0)
    kx, kw = jax.random.split(key)

    x = jax.random.normal(kx, (B, S, 2 * D), dtype=jnp.float32)

    # Deterministic parameter init (matching the module's __init__ shapes):
    ln_gamma = jnp.ones((D,), dtype=jnp.float32)             # LayerNorm default weight
    ln_beta = jnp.zeros((D,), dtype=jnp.float32)             # LayerNorm default bias
    sp_weight = (jax.random.normal(kw, (S, S, 1), dtype=jnp.float32)
                 * (1.0 / jnp.sqrt(float(S))))                # Conv1d(S, S, 1) weight
    sp_bias = jnp.ones((S,), dtype=jnp.float32)              # nn.init.constant_(bias, 1.0)

    out = spatial_gating_unit(x, ln_gamma, ln_beta, sp_weight, sp_bias)
    out = jax.block_until_ready(out)

    assert out.shape == (B, S, D)

    # Tight check against a reference with the same bf16-operand / f32-accumulate matmul.
    ref_lo = reference_matched(x, ln_gamma, ln_beta, sp_weight, sp_bias)
    assert jnp.allclose(out, ref_lo, atol=1e-2, rtol=1e-2), "mismatch vs matched reference"

    # Loose sanity bound against the all-f32 reference (bf16 matmul rounding only).
    ref_hi = reference_f32(x, ln_gamma, ln_beta, sp_weight, sp_bias)
    assert float(jnp.max(jnp.abs(out - ref_hi))) < 1e-1, "mismatch vs f32 reference"

    print("KERNEL_OK")
</pallas_src>

<mosaic_0001>
module attributes {stable_mosaic.version = 11 : i64} {
  func.func @sgu_kernel(%arg0: i32, %arg1: memref<2x8x64xf32, #tpu.memory_space<vmem>>, %arg2: memref<1x32xf32, #tpu.memory_space<vmem>>, %arg3: memref<1x32xf32, #tpu.memory_space<vmem>>, %arg4: memref<8x8xbf16, #tpu.memory_space<vmem>>, %arg5: memref<8x1xf32, #tpu.memory_space<vmem>>, %arg6: memref<2x8x32xf32, #tpu.memory_space<vmem>>) attributes {dimension_semantics = [#tpu.dimension_semantics<parallel>], iteration_bounds = array<i64: 1>, scalar_prefetch = 0 : i64, scratch_operands = 0 : i64, tpu.core_type = #tpu.core_type<tc>, window_params = [{transform_indices = @transform_0, window_bounds = array<i64: 2, 8, 64>}, {pipeline_mode = #tpu.pipeline_mode<synchronous>, transform_indices = @transform_1, window_bounds = array<i64: 1, 32>}, {pipeline_mode = #tpu.pipeline_mode<synchronous>, transform_indices = @transform_2, window_bounds = array<i64: 1, 32>}, {pipeline_mode = #tpu.pipeline_mode<synchronous>, transform_indices = @transform_3, window_bounds = array<i64: 8, 8>}, {pipeline_mode = #tpu.pipeline_mode<synchronous>, transform_indices = @transform_4, window_bounds = array<i64: 8, 1>}, {transform_indices = @transform_5, window_bounds = array<i64: 2, 8, 32>}]} {
    %c0 = arith.constant 0 : index
    %c0_0 = arith.constant 0 : index
    %0 = vector.load %arg2[%c0, %c0_0] : memref<1x32xf32, #tpu.memory_space<vmem>>, vector<1x32xf32>
    %c0_1 = arith.constant 0 : index
    %c0_2 = arith.constant 0 : index
    %1 = vector.load %arg3[%c0_1, %c0_2] : memref<1x32xf32, #tpu.memory_space<vmem>>, vector<1x32xf32>
    %c0_3 = arith.constant 0 : index
    %c0_4 = arith.constant 0 : index
    %2 = vector.load %arg4[%c0_3, %c0_4] : memref<8x8xbf16, #tpu.memory_space<vmem>>, vector<8x8xbf16>
    %c0_5 = arith.constant 0 : index
    %c0_6 = arith.constant 0 : index
    %3 = vector.load %arg5[%c0_5, %c0_6] : memref<8x1xf32, #tpu.memory_space<vmem>>, vector<8x1xf32>
    %c0_7 = arith.constant 0 : index
    %c0_8 = arith.constant 0 : index
    %c0_9 = arith.constant 0 : index
    %4 = vector.load %arg1[%c0_7, %c0_8, %c0_9] : memref<2x8x64xf32, #tpu.memory_space<vmem>>, vector<1x8x64xf32>
    %5 = vector.shape_cast %4 : vector<1x8x64xf32> to vector<8x64xf32>
    %6 = vector.extract_strided_slice %5 {offsets = [0, 0], sizes = [8, 32], strides = [1, 1]} : vector<8x64xf32> to vector<8x32xf32>
    %7 = vector.extract_strided_slice %5 {offsets = [0, 32], sizes = [8, 32], strides = [1, 1]} : vector<8x64xf32> to vector<8x32xf32>
    %cst = arith.constant dense<0.000000e+00> : vector<8xf32>
    %8 = vector.multi_reduction <add>, %7, %cst [1] : vector<8x32xf32> to vector<8xf32>
    %9 = vector.shape_cast %8 : vector<8xf32> to vector<8x1xf32>
    %cst_10 = arith.constant 3.200000e+01 : f32
    %10 = vector.broadcast %cst_10 : f32 to vector<8x1xf32>
    %11 = arith.divf %9, %10 : vector<8x1xf32>
    %12 = vector.broadcast %11 : vector<8x1xf32> to vector<8x32xf32>
    %13 = arith.subf %7, %12 : vector<8x32xf32>
    %14 = arith.mulf %13, %13 : vector<8x32xf32>
    %cst_11 = arith.constant dense<0.000000e+00> : vector<8xf32>
    %15 = vector.multi_reduction <add>, %14, %cst_11 [1] : vector<8x32xf32> to vector<8xf32>
    %16 = vector.shape_cast %15 : vector<8xf32> to vector<8x1xf32>
    %cst_12 = arith.constant 3.200000e+01 : f32
    %17 = vector.broadcast %cst_12 : f32 to vector<8x1xf32>
    %18 = arith.divf %16, %17 : vector<8x1xf32>
    %cst_13 = arith.constant 9.99999974E-6 : f32
    %19 = vector.broadcast %cst_13 : f32 to vector<8x1xf32>
    %20 = arith.addf %18, %19 : vector<8x1xf32>
    %21 = math.rsqrt %20 : vector<8x1xf32>
    %22 = vector.broadcast %21 : vector<8x1xf32> to vector<8x32xf32>
    %23 = arith.mulf %13, %22 : vector<8x32xf32>
    %24 = vector.broadcast %0 : vector<1x32xf32> to vector<8x32xf32>
    %25 = arith.mulf %23, %24 : vector<8x32xf32>
    %26 = vector.broadcast %1 : vector<1x32xf32> to vector<8x32xf32>
    %27 = arith.addf %25, %26 : vector<8x32xf32>
    %28 = arith.truncf %27 : vector<8x32xf32> to vector<8x32xbf16>
    %cst_14 = arith.constant dense<0.000000e+00> : vector<8x32xf32>
    %29 = tpu.matmul %2, %28, %cst_14 {dimension_numbers = #tpu.dot_dimension_numbers<[1], [0], [0], [1], [0, 0, 1, 1], [], []>} : vector<8x8xbf16>, vector<8x32xbf16>, vector<8x32xf32> -> vector<8x32xf32>
    %30 = vector.broadcast %3 : vector<8x1xf32> to vector<8x32xf32>
    %31 = arith.addf %29, %30 : vector<8x32xf32>
    %32 = arith.mulf %6, %31 : vector<8x32xf32>
    %c0_15 = arith.constant 0 : index
    %c0_16 = arith.constant 0 : index
    %c0_17 = arith.constant 0 : index
    %33 = vector.load %arg6[%c0_15, %c0_16, %c0_17] : memref<2x8x32xf32, #tpu.memory_space<vmem>>, vector<1x8x32xf32>
    %34 = vector.shape_cast %33 : vector<1x8x32xf32> to vector<8x32xf32>
    %35 = vector.shape_cast %32 : vector<8x32xf32> to vector<1x8x32xf32>
    tpu.vector_store %arg6[%c0_15, %c0_16, %c0_17], %35 {strides = array<i32>} : memref<2x8x32xf32, #tpu.memory_space<vmem>>, vector<1x8x32xf32>,
    %c1 = arith.constant 1 : index
    %c0_18 = arith.constant 0 : index
    %c0_19 = arith.constant 0 : index
    %36 = vector.load %arg1[%c1, %c0_18, %c0_19] : memref<2x8x64xf32, #tpu.memory_space<vmem>>, vector<1x8x64xf32>
    %37 = vector.shape_cast %36 : vector<1x8x64xf32> to vector<8x64xf32>
    %38 = vector.extract_strided_slice %37 {offsets = [0, 0], sizes = [8, 32], strides = [1, 1]} : vector<8x64xf32> to vector<8x32xf32>
    %39 = vector.extract_strided_slice %37 {offsets = [0, 32], sizes = [8, 32], strides = [1, 1]} : vector<8x64xf32> to vector<8x32xf32>
    %cst_20 = arith.constant dense<0.000000e+00> : vector<8xf32>
    %40 = vector.multi_reduction <add>, %39, %cst_20 [1] : vector<8x32xf32> to vector<8xf32>
    %41 = vector.shape_cast %40 : vector<8xf32> to vector<8x1xf32>
    %cst_21 = arith.constant 3.200000e+01 : f32
    %42 = vector.broadcast %cst_21 : f32 to vector<8x1xf32>
    %43 = arith.divf %41, %42 : vector<8x1xf32>
    %44 = vector.broadcast %43 : vector<8x1xf32> to vector<8x32xf32>
    %45 = arith.subf %39, %44 : vector<8x32xf32>
    %46 = arith.mulf %45, %45 : vector<8x32xf32>
    %cst_22 = arith.constant dense<0.000000e+00> : vector<8xf32>
    %47 = vector.multi_reduction <add>, %46, %cst_22 [1] : vector<8x32xf32> to vector<8xf32>
    %48 = vector.shape_cast %47 : vector<8xf32> to vector<8x1xf32>
    %cst_23 = arith.constant 3.200000e+01 : f32
    %49 = vector.broadcast %cst_23 : f32 to vector<8x1xf32>
    %50 = arith.divf %48, %49 : vector<8x1xf32>
    %cst_24 = arith.constant 9.99999974E-6 : f32
    %51 = vector.broadcast %cst_24 : f32 to vector<8x1xf32>
    %52 = arith.addf %50, %51 : vector<8x1xf32>
    %53 = math.rsqrt %52 : vector<8x1xf32>
    %54 = vector.broadcast %53 : vector<8x1xf32> to vector<8x32xf32>
    %55 = arith.mulf %45, %54 : vector<8x32xf32>
    %56 = vector.broadcast %0 : vector<1x32xf32> to vector<8x32xf32>
    %57 = arith.mulf %55, %56 : vector<8x32xf32>
    %58 = vector.broadcast %1 : vector<1x32xf32> to vector<8x32xf32>
    %59 = arith.addf %57, %58 : vector<8x32xf32>
    %60 = arith.truncf %59 : vector<8x32xf32> to vector<8x32xbf16>
    %cst_25 = arith.constant dense<0.000000e+00> : vector<8x32xf32>
    %61 = tpu.matmul %2, %60, %cst_25 {dimension_numbers = #tpu.dot_dimension_numbers<[1], [0], [0], [1], [0, 0, 1, 1], [], []>} : vector<8x8xbf16>, vector<8x32xbf16>, vector<8x32xf32> -> vector<8x32xf32>
    %62 = vector.broadcast %3 : vector<8x1xf32> to vector<8x32xf32>
    %63 = arith.addf %61, %62 : vector<8x32xf32>
    %64 = arith.mulf %38, %63 : vector<8x32xf32>
    %c1_26 = arith.constant 1 : index
    %c0_27 = arith.constant 0 : index
    %c0_28 = arith.constant 0 : index
    %65 = vector.load %arg6[%c1_26, %c0_27, %c0_28] : memref<2x8x32xf32, #tpu.memory_space<vmem>>, vector<1x8x32xf32>
    %66 = vector.shape_cast %65 : vector<1x8x32xf32> to vector<8x32xf32>
    %67 = vector.shape_cast %64 : vector<8x32xf32> to vector<1x8x32xf32>
    tpu.vector_store %arg6[%c1_26, %c0_27, %c0_28], %67 {strides = array<i32>} : memref<2x8x32xf32, #tpu.memory_space<vmem>>, vector<1x8x32xf32>,
    return
  }
  func.func @transform_0(%arg0: i32) -> (i32, i32, i32) {
    %c0_i32 = arith.constant 0 : i32
    %c0_i32_0 = arith.constant 0 : i32
    %c0_i32_1 = arith.constant 0 : i32
    return %arg0, %c0_i32, %c0_i32_0 : i32, i32, i32
  }
  func.func @transform_1(%arg0: i32) -> (i32, i32) {
    %c0_i32 = arith.constant 0 : i32
    %c0_i32_0 = arith.constant 0 : i32
    %c0_i32_1 = arith.constant 0 : i32
    return %c0_i32, %c0_i32_0 : i32, i32
  }
  func.func @transform_2(%arg0: i32) -> (i32, i32) {
    %c0_i32 = arith.constant 0 : i32
    %c0_i32_0 = arith.constant 0 : i32
    %c0_i32_1 = arith.constant 0 : i32
    return %c0_i32, %c0_i32_0 : i32, i32
  }
  func.func @transform_3(%arg0: i32) -> (i32, i32) {
    %c0_i32 = arith.constant 0 : i32
    %c0_i32_0 = arith.constant 0 : i32
    %c0_i32_1 = arith.constant 0 : i32
    return %c0_i32, %c0_i32_0 : i32, i32
  }
  func.func @transform_4(%arg0: i32) -> (i32, i32) {
    %c0_i32 = arith.constant 0 : i32
    %c0_i32_0 = arith.constant 0 : i32
    %c0_i32_1 = arith.constant 0 : i32
    return %c0_i32, %c0_i32_0 : i32, i32
  }
  func.func @transform_5(%arg0: i32) -> (i32, i32, i32) {
    %c0_i32 = arith.constant 0 : i32
    %c0_i32_0 = arith.constant 0 : i32
    %c0_i32_1 = arith.constant 0 : i32
    return %arg0, %c0_i32, %c0_i32_0 : i32, i32, i32
  }
}

</mosaic_0001>

<bundles_post_ra>
// kernel: tpu_custom_call.1
= control target key start
LH: loop header
LB: loop body
LE: loop exit
PB: predicated region body
PF: predicated region fallthrough
CT: control target
= control target key end

     0   :  { %10 = vsyncpa [#allocation3], 0  ;;  %s418_s0 = inlined_call_operand.hbm [shape: f32[2,8,64], index: 0, kind: input, shape index: {}]   ;;  %s419_s1 = inlined_call_operand.vmem [shape: f32[1,32], index: 1, kind: input, shape index: {}]   ;;  %s420_s2 = inlined_call_operand.vmem [shape: f32[1,32], index: 2, kind: input, shape index: {}]   ;;  %s421_s3 = inlined_call_operand.vmem [shape: bf16[8,8], index: 3, kind: input, shape index: {}]   ;;  %s422_s4 = inlined_call_operand.vmem [shape: f32[8,1], index: 4, kind: input, shape index: {}]   ;;  %s423_s5 = inlined_call_operand.hbm [shape: f32[2,8,32], index: 5, kind: output, shape index: {}]  }
   0x1   :  { %11 = vsyncpa [#allocation4], 0  ;;  %s315_s18 = smov [#allocation2]   ;;  %s267_s22 = scalar_lea.hbm %s418_s0, 256 }
   0x2   :  { %s17_s19 = sshll.u32 %s315_s18, 4  ;;  %p268_p0 = scmp.ne.s32.totalorder %s418_s0, %s267_s22  ;;  %s18_s19 = int_to_ptr.vmem [resolvable:$true] %s17_s19 }
   0x3   :  { %p271_p1 = scmp.lt.u32.totalorder %s267_s22, %s418_s0 }
   0x5   :  { %p273_p2 = pnand %p271_p1, %p268_p0 }
   0x7   :  { %276 = shalt.err (!%p273_p2)
}
   0x8   :  { %s277_s27 = scalar_lea.vmem %s18_s19, 256  ;;  %p282_p4 = scmp.lt.s32.totalorder %s18_s19, %s18_s19 }
   0x9   :  { %p278_p3 = scmp.ne.s32.totalorder %s18_s19, %s277_s27  ;;  %p283_p5 = scmp.lt.s32.totalorder %s277_s27, %s277_s27 }
   0xb   :  { %p284_p6 = por %p283_p5, %p282_p4 }
   0xd   :  { %p285_p7 = pnand %p284_p6, %p278_p3 }
   0xf   :  { %288 = shalt.err (!%p285_p7)
}
  0x10   :  { %s316_s28 = smov 128   ;;  %s317_s29 = smov 8  }
  0x11   :  { %23 = dma.hbm_to_vmem [thread:$0]  %s418_s0, 256, %s18_s19, [#allocation3], %s316_s28, %s316_s28, %s317_s29  }
  0x12   :  { %311 = dma.done.wait [#allocation3], 256  }
  0x13   :  { %312 = vsyncadd [#allocation3], 4294967040  ;;  %v369_v0 = vld [vmem:[#allocation2] sm:$0xff]  ;;  %s318_s7 = smov 96   ;;  %v373_v1 = vld [vmem:[#allocation2 + $0x8] sm:$0xff]  ;;  %vm45_vm0 = vcmask 261120  }
  0x14   :  { %42 = vrot.lane.b32.xlu0 %v369_v0, %s318_s7  ;;  %v234_v18 = vld [vmem:[%s420_s2] ss:$0 sm:$0xff]  ;;  %s319_s11 = smov 32   ;;  %v320_v26 = vmov 0.0   ;;  %vm321_vm1 = vmmov 0   ;;  %v322_v35 = vmov 0  }
  0x15   :  { %v233_v19 = vld [vmem:[%s419_s1] ss:$0 sm:$0xff]  ;;  %241 = vmatprep.subr.bf16.mxu0 %v320_v26  ;;  %247 = vmatprep.subr.bf16.mxu1 %v320_v26  ;;  %vm95_vm2 = vcmask 1043456   ;;  %vm91_vm3 = vcmask 64512  }
  0x16   :  { %243 = vmatprep.mubr.msk.bf16.mxu0 %vm321_vm1, %v320_v26  ;;  %249 = vmatprep.mubr.msk.bf16.mxu1 %vm321_vm1, %v320_v26  ;;  %v39_v40 = vld [vmem:[%s422_s4] sm:$0xff]  ;;  %s323_s4 = smov [#allocation5]  }
  0x17   :  { %262 = vset.pattern.permute.xlu0 %v322_v35  ;;  %v38_v43 = vld [vmem:[%s421_s3] sm:$0xf]  ;;  %s221_s14 = sshll.u32 %s323_s4, 4  ;;  %s222_s14 = int_to_ptr.vmem [resolvable:$true] %s221_s14 }
  0x18   :  { %144 = vrot.lane.b32.xlu0 %v373_v1, %s318_s7  ;;  %s289_s3 = scalar_lea.vmem %s222_s14, 256  ;;  %p294_p9 = scmp.lt.s32.totalorder %s222_s14, %s222_s14 }
  0x19   :  { %p290_p8 = scmp.ne.s32.totalorder %s222_s14, %s289_s3  ;;  %p295_p10 = scmp.lt.s32.totalorder %s289_s3, %s289_s3 }
  0x1b   :  { %p296_p11 = por %p295_p10, %p294_p9 }
  0x1d   :  { %p297_p12 = pnand %p296_p11, %p290_p8 }
  0x86   :  { %v43_v2 = vpop.permute.xlu0 %42 }
  0x87   :  { %v46_v3 = vsel %vm45_vm0, %v43_v2, 0.0 }
  0x88   :  { %47 = vadd.xlane.f32.xlu1 %v46_v3 }
  0x8a   :  { %v145_v4 = vpop.permute.xlu0 %144 }
  0x8b   :  { %v147_v5 = vsel %vm45_vm0, %v145_v4, 0.0 }
  0x8c   :  { %148 = vadd.xlane.f32.xlu1 %v147_v5 }
 0x115   :  { %v48_v6 = vpop.xlane.xlu1 %47 }
 0x116   :  { %v50_v7 = vmul.f32 0.03125, %v48_v6 }
 0x118   :  { %v51_v8 = vsub.f32 %v369_v0, %v50_v7 }
 0x119   :  { %v149_v9 = vpop.xlane.xlu1 %148 }
 0x11a   :  { %v150_v10 = vmul.f32 0.03125, %v149_v9  ;;  %v52_v11 = vmul.f32 %v51_v8, %v51_v8 }
 0x11c   :  { %v151_v12 = vsub.f32 %v373_v1, %v150_v10  ;;  %54 = vrot.lane.b32.xlu0 %v52_v11, %s318_s7 }
 0x11e   :  { %v152_v13 = vmul.f32 %v151_v12, %v151_v12 }
 0x120   :  { %154 = vrot.lane.b32.xlu1 %v152_v13, %s318_s7 }
 0x18e   :  { %v55_v14 = vpop.permute.xlu0 %54 }
 0x18f   :  { %v57_v15 = vsel %vm45_vm0, %v55_v14, 0.0 }
 0x190   :  { %58 = vadd.xlane.f32.xlu0 %v57_v15 }
 0x192   :  { %v155_v16 = vpop.permute.xlu1 %154 }
 0x193   :  { %v157_v17 = vsel %vm45_vm0, %v155_v16, 0.0 }
 0x194   :  { %158 = vadd.xlane.f32.xlu1 %v157_v17 }
 0x1a5   :  { %78 = vrot.lane.b32.xlu1 %v234_v18, %s319_s11 }
 0x1a6   :  { %69 = vrot.lane.b32.xlu0 %v233_v19, %s319_s11 }
 0x21d   :  { %v59_v20 = vpop.xlane.xlu0 %58 }
 0x21e   :  { %v60_v21 = vmul.f32 0.03125, %v59_v20 }
 0x220   :  { %v61_v22 = vadd.f32 1e-05, %v60_v21 }
 0x221   :  { %v159_v23 = vpop.xlane.xlu1 %158  ;;  %v70_v28 = vpop.permute.xlu0 %69 }
 0x222   :  { %263 = vrsqrt.f32 %v61_v22  ;;  %v160_v24 = vmul.f32 0.03125, %v159_v23 }
 0x224   :  { %v161_v25 = vadd.f32 1e-05, %v160_v24 }
 0x225   :  { %v79_v30 = vpop.permute.xlu1 %78 }
 0x226   :  { %265 = vrsqrt.f32 %v161_v25 }
 0x22c   :  { %v264_v27 = vpop.eup %263 }
 0x22d   :  { %v63_v29 = vmul.f32 %v264_v27, %v51_v8 }
 0x22f   :  { %v72_v31 = vmul.f32 %v70_v28, %v63_v29 }
 0x230   :  { %v266_v32 = vpop.eup %265 }
 0x231   :  { %v163_v33 = vmul.f32 %v266_v32, %v151_v12  ;;  %v81_v34 = vadd.f32 %v79_v30, %v72_v31 }
 0x233   :  { %v164_v36 = vmul.f32 %v163_v33, %v70_v28  ;;  %v82_v37 = vpack.c.bf16 %v81_v34, %v81_v34 }
 0x235   :  { %v165_v38 = vadd.f32 %v164_v36, %v79_v30  ;;  %89 = vrot.lane.b32.xlu0 %v82_v37, %s318_s7 }
 0x237   :  { %v166_v39 = vpack.c.bf16 %v165_v38, %v165_v38 }
 0x239   :  { %168 = vrot.lane.b32.xlu0 %v166_v39, %s318_s7 }
 0x23d   :  { %85 = vperm.xlu0 %262, %v39_v40  }
 0x2a7   :  { %v90_v41 = vpop.permute.xlu0 %89 }
 0x2a8   :  { %v97_v42 = vsel %vm95_vm2, %v90_v41, 0 }
 0x2a9   :  { %242 = vmatpush3.bf16.msra.mxu0 %v97_v42 }
 0x2ab   :  { %v169_v44 = vpop.permute.xlu0 %168 }
 0x2ac   :  { %244 = vmatmul.mubr.msk.bf16.vlgmr.msra.gmra.mrb[0].mxu0 %vm91_vm3, %v38_v43  ;;  %v171_v45 = vsel %vm95_vm2, %v169_v44, 0 }
 0x2ad   :  { %248 = vmatpush3.bf16.msra.mxu1 %v171_v45 }
 0x2b0   :  { %250 = vmatmul.mubr.msk.bf16.vlgmr.msra.gmra.mrb[0].mxu1 %vm91_vm3, %v38_v43 }
 0x2bc   :  { %v86_v46 = vpop.permute.xlu0 %85 }
 0x37f   :  { %v133_v47 = vpop.f32.mrb[0].mxu0 }
 0x380   :  { %v245_v48 = vpop.f32.mrb[1].mxu0  ;;  %v134_v49 = vadd.f32 %v133_v47, %v86_v46 }
 0x381   :  { %v136_v50 = vpop.f32.mrb[2].mxu0 }
 0x382   :  { %v246_v51 = vpop.f32.mrb[3].mxu0  ;;  %v139_v52 = vmul.f32 %v134_v49, %v369_v0 }
 0x383   :  { %v207_v53 = vpop.f32.mrb[0].mxu1 }
 0x384   :  { %v208_v54 = vadd.f32 %v207_v53, %v86_v46  ;;  %140 = vst.msk [vmem:[#allocation5] sm:$0xff] %vm45_vm0, %v139_v52  ;;  %v251_v55 = vpop.f32.mrb[1].mxu1 }
 0x385   :  { %v210_v56 = vpop.f32.mrb[2].mxu1 }
 0x386   :  { %v213_v57 = vmul.f32 %v208_v54, %v373_v1  ;;  %v252_v58 = vpop.f32.mrb[3].mxu1 }
 0x388   :  { %215 = vst.msk [vmem:[#allocation5 + $0x8] sm:$0xff] %vm45_vm0, %v213_v57 }
 0x389   :  { %300 = shalt.err (!%p297_p12)
}
 0x38a   :  { %s301_s17 = scalar_lea.hbm %s423_s5, 256 }
 0x38b   :  { %p302_p13 = scmp.ne.s32.totalorder %s423_s5, %s301_s17  ;;  %p305_p0 = scmp.lt.u32.totalorder %s301_s17, %s423_s5 }
 0x38d   :  { %p307_p1 = pnand %p305_p0, %p302_p13 }
 0x38f   :  { %310 = shalt.err (!%p307_p1)
}
 0x390   :  { %227 = dma.vmem_to_hbm [thread:$0]  %s222_s14, 256, %s423_s5, [#allocation4], %s316_s28, %s316_s28, %s317_s29  }
 0x391   :  { %313 = dma.done.wait [#allocation4], 256  }
 0x392   :  { %314 = vsyncadd [#allocation4], 4294967040 }
 0x393   :  { %231 = vsyncpa [#allocation3], 1 }
 0x394   :  { %232 = vsyncpa [#allocation4], 1 }

</bundles_post_ra>
